<compile_context>
chip_gen: v5e
topology: v5e:2x2
jax: 0.10.0
libtpu: 0.0.40
codegen_flags: <defaults>
</compile_context>

<pallas_src>
import math

import jax
import jax.numpy as jnp
from jax.experimental import pallas as pl
from jax.experimental.pallas import tpu as pltpu

HIDDEN = 32
LANE = 128
SUBLANE = 8


def _round_up(x, m):
    return (x + m - 1) // m * m


def _policy_kernel(x_ref, w1_ref, b1_ref, w2_ref, b2_ref, wm_ref, bm_ref, out_ref):
    # x tile: (TB, D_pad) bf16.  Weights: bf16, VMEM-resident across the grid.
    # Biases: f32.  MXU matmuls accumulate in f32; elementwise stays f32.
    x = x_ref[...]

    # Linear(obs, 32) + ReLU
    h1 = jnp.dot(x, w1_ref[...], preferred_element_type=jnp.float32) + b1_ref[...]
    h1 = jnp.maximum(h1, 0.0)

    # Linear(32, 32) + ReLU
    h2 = jnp.dot(h1.astype(jnp.bfloat16), w2_ref[...],
                 preferred_element_type=jnp.float32) + b2_ref[...]
    h2 = jnp.maximum(h2, 0.0)

    # mean head: Linear(32, 128-padded) + tanh (tanh -> EUP slot, ~free)
    m = jnp.dot(h2.astype(jnp.bfloat16), wm_ref[...],
                preferred_element_type=jnp.float32) + bm_ref[...]
    out_ref[...] = jnp.tanh(m)


def a2c_policy_forward(x, kparams, *, block_b=512):
    """Forward pass.  x: (B, obs_dim) float.  kparams: from prepare_kernel_params."""
    B, D = x.shape
    n_actions = kparams["n_actions"]
    D_pad = kparams["w1"].shape[0]
    A_pad = kparams["wm"].shape[1]

    x = x.astype(jnp.float32)                       # matches x.float() in reference
    if D_pad != D:                                   # zero-pad features (w1 pad rows are 0)
        x = jnp.pad(x, ((0, 0), (0, D_pad - D)))
    xb = x.astype(jnp.bfloat16)                      # halves HBM traffic for the only big input

    if B < block_b:
        # Tiny batch: Pallas launch + DMA setup would dominate; let XLA fuse it.
        h1 = jnp.maximum(
            jnp.dot(xb, kparams["w1"], preferred_element_type=jnp.float32) + kparams["b1"], 0.0)
        h2 = jnp.maximum(
            jnp.dot(h1.astype(jnp.bfloat16), kparams["w2"],
                    preferred_element_type=jnp.float32) + kparams["b2"], 0.0)
        out = jnp.tanh(
            jnp.dot(h2.astype(jnp.bfloat16), kparams["wm"],
                    preferred_element_type=jnp.float32) + kparams["bm"])
        return out[:, :n_actions]

    TB = block_b
    B_pad = _round_up(B, TB)
    if B_pad != B:
        xb = jnp.pad(xb, ((0, B_pad - B), (0, 0)))

    full = lambda i: (0, 0)  # weights/biases: same block every step -> stay resident in VMEM

    out = pl.pallas_call(
        _policy_kernel,
        out_shape=jax.ShapeDtypeStruct((B_pad, A_pad), jnp.float32),
        grid=(B_pad // TB,),
        in_specs=[
            pl.BlockSpec((TB, D_pad), lambda i: (i, 0)),      # x tile (pipelined)
            pl.BlockSpec((D_pad, HIDDEN), full),               # w1
            pl.BlockSpec((1, HIDDEN), full),                   # b1
            pl.BlockSpec((HIDDEN, HIDDEN), full),              # w2
            pl.BlockSpec((1, HIDDEN), full),                   # b2
            pl.BlockSpec((HIDDEN, A_pad), full),               # wm (padded to 128 cols)
            pl.BlockSpec((1, A_pad), full),                    # bm (padded to 128 cols)
        ],
        out_specs=pl.BlockSpec((TB, A_pad), lambda i: (i, 0)), # lane-dense 128-wide store
        compiler_params=pltpu.CompilerParams(
            dimension_semantics=("parallel",)),                # 2 TCs on v7x
    )(xb, kparams["w1"], kparams["b1"], kparams["w2"], kparams["b2"],
      kparams["wm"], kparams["bm"])

    return out[:B, :n_actions]


def init_params(key, obs_dim, n_actions):
    """nn.Linear-default init (U[-1/sqrt(fan_in), 1/sqrt(fan_in)]); weights stored (in, out).

    mean_l weight scaled by 0.1 as in __init__.  var_l / logstd exist in the
    module but are unused by forward, so they are created but never fed to the
    kernel.
    """
    ks = jax.random.split(key, 8)

    def lin(kw, kb, fan_in, fan_out):
        bound = 1.0 / math.sqrt(fan_in)
        w = jax.random.uniform(kw, (fan_in, fan_out), jnp.float32, -bound, bound)
        b = jax.random.uniform(kb, (1, fan_out), jnp.float32, -bound, bound)
        return w, b

    w1, b1 = lin(ks[0], ks[1], obs_dim, HIDDEN)
    w2, b2 = lin(ks[2], ks[3], HIDDEN, HIDDEN)
    wm, bm = lin(ks[4], ks[5], HIDDEN, n_actions)
    wm = wm * 0.1  # self.mean_l.weight.data.mul_(0.1)

    # Unused-in-forward parameters (parity with the module only):
    wv, bv = lin(ks[6], ks[7], HIDDEN, n_actions)
    wv = wv * 0.1
    logstd = jnp.zeros((n_actions,), jnp.float32)

    return {"w1": w1, "b1": b1, "w2": w2, "b2": b2,
            "wm": wm, "bm": bm, "wv": wv, "bv": bv, "logstd": logstd}


def prepare_kernel_params(params, obs_dim, n_actions):
    """Pad + cast once at init: bf16 matmul weights, f32 biases, 128-wide head."""
    D_pad = max(_round_up(obs_dim, SUBLANE), SUBLANE)
    A_pad = max(_round_up(n_actions, LANE), LANE)

    w1 = jnp.zeros((D_pad, HIDDEN), jnp.float32).at[:obs_dim].set(params["w1"])
    wm = jnp.zeros((HIDDEN, A_pad), jnp.float32).at[:, :n_actions].set(params["wm"])
    bm = jnp.zeros((1, A_pad), jnp.float32).at[:, :n_actions].set(params["bm"])

    return {
        "w1": w1.astype(jnp.bfloat16),
        "b1": params["b1"].astype(jnp.float32),
        "w2": params["w2"].astype(jnp.bfloat16),
        "b2": params["b2"].astype(jnp.float32),
        "wm": wm.astype(jnp.bfloat16),
        "bm": bm,
        "n_actions": n_actions,
    }


if __name__ == "__main__":
    obs_dim = 16     # input_shape[0]
    n_actions = 4    # n_actions[0]
    batch = 256      # small but enough rows to exercise the batch grid
    block_b = 64     # -> grid of 4 tiles

    key = jax.random.PRNGKey(0)
    k_param, k_x = jax.random.split(key)
    params = init_params(k_param, obs_dim, n_actions)
    kparams = prepare_kernel_params(params, obs_dim, n_actions)

    x = jax.random.normal(k_x, (batch, obs_dim), jnp.float32)

    out = a2c_policy_forward(x, kparams, block_b=block_b)
    out = jax.block_until_ready(out)
    assert out.shape == (batch, n_actions)

    # Reference 1: exact module semantics in f32 (loose tol: kernel uses bf16 matmuls).
    h1 = jnp.maximum(x @ params["w1"] + params["b1"], 0.0)
    h2 = jnp.maximum(h1 @ params["w2"] + params["b2"], 0.0)
    ref_f32 = jnp.tanh(h2 @ params["wm"] + params["bm"])
    assert jnp.allclose(out, ref_f32, atol=2e-2, rtol=2e-2)

    # Reference 2: pure-JAX with the same bf16 casts / f32 accumulation (tight tol).
    xb = x.astype(jnp.bfloat16)
    r1 = jnp.maximum(jnp.dot(xb, kparams["w1"][:obs_dim],
                             preferred_element_type=jnp.float32) + kparams["b1"], 0.0)
    r2 = jnp.maximum(jnp.dot(r1.astype(jnp.bfloat16), kparams["w2"],
                             preferred_element_type=jnp.float32) + kparams["b2"], 0.0)
    ref_bf16 = jnp.tanh(jnp.dot(r2.astype(jnp.bfloat16), kparams["wm"],
                                preferred_element_type=jnp.float32) + kparams["bm"])[:, :n_actions]
    assert jnp.allclose(out, ref_bf16, atol=1e-3, rtol=1e-3)

    print("KERNEL_OK")
</pallas_src>

<mosaic_0001>
module attributes {stable_mosaic.version = 11 : i64} {
  func.func @_policy_kernel(%arg0: i32, %arg1: memref<64x16xbf16, #tpu.memory_space<vmem>>, %arg2: memref<16x32xbf16, #tpu.memory_space<vmem>>, %arg3: memref<1x32xf32, #tpu.memory_space<vmem>>, %arg4: memref<32x32xbf16, #tpu.memory_space<vmem>>, %arg5: memref<1x32xf32, #tpu.memory_space<vmem>>, %arg6: memref<32x128xbf16, #tpu.memory_space<vmem>>, %arg7: memref<1x128xf32, #tpu.memory_space<vmem>>, %arg8: memref<64x128xf32, #tpu.memory_space<vmem>>) attributes {dimension_semantics = [#tpu.dimension_semantics<parallel>], iteration_bounds = array<i64: 4>, scalar_prefetch = 0 : i64, scratch_operands = 0 : i64, tpu.core_type = #tpu.core_type<tc>, window_params = [{transform_indices = @transform_0, window_bounds = array<i64: 64, 16>}, {pipeline_mode = #tpu.pipeline_mode<synchronous>, transform_indices = @transform_1, window_bounds = array<i64: 16, 32>}, {pipeline_mode = #tpu.pipeline_mode<synchronous>, transform_indices = @transform_2, window_bounds = array<i64: 1, 32>}, {pipeline_mode = #tpu.pipeline_mode<synchronous>, transform_indices = @transform_3, window_bounds = array<i64: 32, 32>}, {pipeline_mode = #tpu.pipeline_mode<synchronous>, transform_indices = @transform_4, window_bounds = array<i64: 1, 32>}, {pipeline_mode = #tpu.pipeline_mode<synchronous>, transform_indices = @transform_5, window_bounds = array<i64: 32, 128>}, {pipeline_mode = #tpu.pipeline_mode<synchronous>, transform_indices = @transform_6, window_bounds = array<i64: 1, 128>}, {transform_indices = @transform_7, window_bounds = array<i64: 64, 128>}]} {
    %c0 = arith.constant 0 : index
    %c0_0 = arith.constant 0 : index
    %0 = vector.load %arg1[%c0, %c0_0] : memref<64x16xbf16, #tpu.memory_space<vmem>>, vector<64x16xbf16>
    %c0_1 = arith.constant 0 : index
    %c0_2 = arith.constant 0 : index
    %1 = vector.load %arg2[%c0_1, %c0_2] : memref<16x32xbf16, #tpu.memory_space<vmem>>, vector<16x32xbf16>
    %cst = arith.constant dense<0.000000e+00> : vector<64x32xf32>
    %2 = tpu.matmul %0, %1, %cst {dimension_numbers = #tpu.dot_dimension_numbers<[1], [0], [0], [1], [0, 0, 1, 1], [], []>} : vector<64x16xbf16>, vector<16x32xbf16>, vector<64x32xf32> -> vector<64x32xf32>
    %c0_3 = arith.constant 0 : index
    %c0_4 = arith.constant 0 : index
    %3 = vector.load %arg3[%c0_3, %c0_4] : memref<1x32xf32, #tpu.memory_space<vmem>>, vector<1x32xf32>
    %4 = vector.broadcast %3 : vector<1x32xf32> to vector<64x32xf32>
    %5 = arith.addf %2, %4 : vector<64x32xf32>
    %cst_5 = arith.constant 0.000000e+00 : f32
    %6 = vector.broadcast %cst_5 : f32 to vector<64x32xf32>
    %7 = arith.maximumf %5, %6 : vector<64x32xf32>
    %8 = arith.truncf %7 : vector<64x32xf32> to vector<64x32xbf16>
    %c0_6 = arith.constant 0 : index
    %c0_7 = arith.constant 0 : index
    %9 = vector.load %arg4[%c0_6, %c0_7] : memref<32x32xbf16, #tpu.memory_space<vmem>>, vector<32x32xbf16>
    %cst_8 = arith.constant dense<0.000000e+00> : vector<64x32xf32>
    %10 = tpu.matmul %8, %9, %cst_8 {dimension_numbers = #tpu.dot_dimension_numbers<[1], [0], [0], [1], [0, 0, 1, 1], [], []>} : vector<64x32xbf16>, vector<32x32xbf16>, vector<64x32xf32> -> vector<64x32xf32>
    %c0_9 = arith.constant 0 : index
    %c0_10 = arith.constant 0 : index
    %11 = vector.load %arg5[%c0_9, %c0_10] : memref<1x32xf32, #tpu.memory_space<vmem>>, vector<1x32xf32>
    %12 = vector.broadcast %11 : vector<1x32xf32> to vector<64x32xf32>
    %13 = arith.addf %10, %12 : vector<64x32xf32>
    %cst_11 = arith.constant 0.000000e+00 : f32
    %14 = vector.broadcast %cst_11 : f32 to vector<64x32xf32>
    %15 = arith.maximumf %13, %14 : vector<64x32xf32>
    %16 = arith.truncf %15 : vector<64x32xf32> to vector<64x32xbf16>
    %c0_12 = arith.constant 0 : index
    %c0_13 = arith.constant 0 : index
    %17 = vector.load %arg6[%c0_12, %c0_13] : memref<32x128xbf16, #tpu.memory_space<vmem>>, vector<32x128xbf16>
    %cst_14 = arith.constant dense<0.000000e+00> : vector<64x128xf32>
    %18 = tpu.matmul %16, %17, %cst_14 {dimension_numbers = #tpu.dot_dimension_numbers<[1], [0], [0], [1], [0, 0, 1, 1], [], []>} : vector<64x32xbf16>, vector<32x128xbf16>, vector<64x128xf32> -> vector<64x128xf32>
    %c0_15 = arith.constant 0 : index
    %c0_16 = arith.constant 0 : index
    %19 = vector.load %arg7[%c0_15, %c0_16] : memref<1x128xf32, #tpu.memory_space<vmem>>, vector<1x128xf32>
    %20 = vector.broadcast %19 : vector<1x128xf32> to vector<64x128xf32>
    %21 = arith.addf %18, %20 : vector<64x128xf32>
    %22 = math.tanh %21 : vector<64x128xf32>
    %c0_17 = arith.constant 0 : index
    %c0_18 = arith.constant 0 : index
    %23 = vector.load %arg8[%c0_17, %c0_18] : memref<64x128xf32, #tpu.memory_space<vmem>>, vector<64x128xf32>
    tpu.vector_store %arg8[%c0_17, %c0_18], %22 {strides = array<i32>} : memref<64x128xf32, #tpu.memory_space<vmem>>, vector<64x128xf32>,
    return
  }
  func.func @transform_0(%arg0: i32) -> (i32, i32) {
    %c0_i32 = arith.constant 0 : i32
    %c0_i32_0 = arith.constant 0 : i32
    return %arg0, %c0_i32 : i32, i32
  }
  func.func @transform_1(%arg0: i32) -> (i32, i32) {
    %c0_i32 = arith.constant 0 : i32
    %c0_i32_0 = arith.constant 0 : i32
    %c0_i32_1 = arith.constant 0 : i32
    return %c0_i32, %c0_i32_0 : i32, i32
  }
  func.func @transform_2(%arg0: i32) -> (i32, i32) {
    %c0_i32 = arith.constant 0 : i32
    %c0_i32_0 = arith.constant 0 : i32
    %c0_i32_1 = arith.constant 0 : i32
    return %c0_i32, %c0_i32_0 : i32, i32
  }
  func.func @transform_3(%arg0: i32) -> (i32, i32) {
    %c0_i32 = arith.constant 0 : i32
    %c0_i32_0 = arith.constant 0 : i32
    %c0_i32_1 = arith.constant 0 : i32
    return %c0_i32, %c0_i32_0 : i32, i32
  }
  func.func @transform_4(%arg0: i32) -> (i32, i32) {
    %c0_i32 = arith.constant 0 : i32
    %c0_i32_0 = arith.constant 0 : i32
    %c0_i32_1 = arith.constant 0 : i32
    return %c0_i32, %c0_i32_0 : i32, i32
  }
  func.func @transform_5(%arg0: i32) -> (i32, i32) {
    %c0_i32 = arith.constant 0 : i32
    %c0_i32_0 = arith.constant 0 : i32
    %c0_i32_1 = arith.constant 0 : i32
    return %c0_i32, %c0_i32_0 : i32, i32
  }
  func.func @transform_6(%arg0: i32) -> (i32, i32) {
    %c0_i32 = arith.constant 0 : i32
    %c0_i32_0 = arith.constant 0 : i32
    %c0_i32_1 = arith.constant 0 : i32
    return %c0_i32, %c0_i32_0 : i32, i32
  }
  func.func @transform_7(%arg0: i32) -> (i32, i32) {
    %c0_i32 = arith.constant 0 : i32
    %c0_i32_0 = arith.constant 0 : i32
    return %arg0, %c0_i32 : i32, i32
  }
}

</mosaic_0001>

<bundles_post_ra>
// kernel: tpu_custom_call.1
= control target key start
LH: loop header
LB: loop body
LE: loop exit
PB: predicated region body
PF: predicated region fallthrough
CT: control target
= control target key end

     0   :  { %12 = vsyncpa [#allocation3], 0  ;;  %s975_s0 = inlined_call_operand.vmem [shape: bf16[256,16], index: 0, kind: input, shape index: {}]   ;;  %s976_s1 = inlined_call_operand.vmem [shape: bf16[16,32], index: 1, kind: input, shape index: {}]   ;;  %s977_s2 = inlined_call_operand.vmem [shape: f32[1,32], index: 2, kind: input, shape index: {}]   ;;  %s978_s3 = inlined_call_operand.vmem [shape: bf16[32,32], index: 3, kind: input, shape index: {}]   ;;  %s979_s4 = inlined_call_operand.vmem [shape: f32[1,32], index: 4, kind: input, shape index: {}]   ;;  %s980_s5 = inlined_call_operand.vmem [shape: bf16[32,128], index: 5, kind: input, shape index: {}]   ;;  %s981_s6 = inlined_call_operand.vmem [shape: f32[1,128], index: 6, kind: input, shape index: {}]   ;;  %s982_s7 = inlined_call_operand.hbm [shape: f32[256,128], index: 7, kind: output, shape index: {}]  }
   0x1   :  { %14 = vsyncpa [#allocation3 + $0x1], 0  ;;  %s844_s24 = smov 0   ;;  %s846_s25 = smov 0  }
   0x2   :  { %s848_s26 = smov 0   ;;  %s850_s27 = smov 0  }
   0x3 LB: > { %s865_s28 = sadd.s32 4294967295, %s800_s27   ;;  %s604_s29 = sadd.s32 4294967294, %s800_s27   ;;  %s800_s27 = sphi %s850_s27, %s988_s27   ;;  %s796_s26 = sphi %s848_s26, %s987_s26   ;;  %s792_s25 = sphi %s846_s25, %s986_s25   ;;  %s788_s24 = sphi %s844_s24, %s985_s24  }
   0x4   : > { %s869_s30 = sadd.s32 1, %s800_s27   ;;  %s179_s8 = sadd.s32 1, %s796_s26 }
   0x5   : > { %s176_s9 = ssub.s32 %s800_s27, %s869_s30  ;;  %p189_p0 = scmp.ne.s32.totalorder %s796_s26, %s792_s25 }
   0x6   : > { %p177_p1 = scmp.eq.s32.totalorder %s176_s9, 0  ;;  %p190_p2 = scmp.eq.s32.totalorder %s865_s28, 3 }
   0x7   : > { %p195_p3 = scmp.ne.s32.totalorder %s792_s25, %s788_s24  ;;  %p196_p4 = scmp.eq.s32.totalorder %s604_s29, 3 }
   0x8   : > { %s880_s10 = scalar_select %p177_p1, %s796_s26, %s179_s8  }
   0x9   : > { %p882_p5 = por %p190_p2, %p189_p0  ;;  %p886_p6 = por %p196_p4, %p195_p3 }
   0xa   : > { %p607_p7 = scmp.ge.s32.totalorder %s800_s27, 1  ;;  %p241_p8 = scmp.lt.s32.totalorder %s800_s27, 5 }
   0xc   : > { %p242_p9 = pnand %p607_p7, %p241_p8 }
   0xd   : > { %s609_s15 = sshll.u32 (!%p242_p9), %s865_s28, 3  ;;  %s270_s20 = sand.u32 (!%p242_p9), 1, %s792_s25  }
   0xe   : > { %245 = sbr.rel (%p242_p9) target bundleno = 510 (0x1fe), region = 48  ;;  %p274_p10 = scmp.lt.s32.totalorder (!%p242_p9), %s609_s15, 31 }
   0xf   : > { %s608_s21 = sshll.u32 (!%p242_p9), %s270_s20, 6  ;;  %s673_s23 = sshll.u32 (!%p242_p9), %s865_s28, 6 }
  0x10   : > { %s931_s22 = scalar_lea.vmem (!%p242_p9), [#allocation2], %s608_s21  ;;  %s538_s9 = scalar_lea.hbm (!%p242_p9), %s982_s7, %s673_s23 }
  0x11   : > { %s539_s13 = sshll.u32 (!%p242_p9), %s931_s22, 4  ;;  %s541_s14 = sshll.u32 (!%p242_p9), %s538_s9, 4  ;;  %s540_s13 = int_to_ptr.vmem [resolvable:$true] %s539_s13  ;;  %s542_s14 = int_to_ptr.hbm [resolvable:$true] %s541_s14 }
  0x13   : > { %v668_v0 = vld [vmem:[%s976_s1] sm:$0xff]  ;;  %s990_s15 = smov (!%p274_p10, %s609_s15), 31  ;;  %vm321_vm0 = vcmask 130048   ;;  %v670_v5 = vld [vmem:[%s978_s3 + $0x8] sm:$0xff]  ;;  %vm395_vm1 = vcmask 261120  }
  0x14   : > { %341 = vmatpush.bf16.msra.mxu0 %v668_v0  ;;  %s610_s16 = sshll.u32 %s990_s15, 2  ;;  %414 = vmatpush.bf16.msra.mxu1 %v670_v5  ;;  %v669_v6 = vld [vmem:[%s978_s3] sm:$0xff]  ;;  %v672_v36 = vld [vmem:[%s980_s5 + $0x8] sm:$0xff]  ;;  %s527_s15 = scalar_lea.sflag [#allocation3], %s270_s20 }
  0x15   : > { %s277_s19 = scalar_lea.vmem %s975_s0, %s610_s16  ;;  %674 = vmatpush.bf16.msra.mxu3 %v670_v5  ;;  %v719_v8 = vld [vmem:[%s977_s2] ss:$0 sm:$0xff]  ;;  %676 = vmatpush.bf16.msra.mxu2 %v672_v36  ;;  %s752_s16 = sshra.s32 %s542_s14, 4  ;;  %s753_s16 = int_to_ptr.hbm [resolvable:$true] %s752_s16 }
  0x16   : > { %v664_v1 = vld [vmem:[%s277_s19] sm:$0xff]  ;;  %v665_v2 = vld [vmem:[%s277_s19 + $0x8] sm:$0xff]  ;;  %v666_v3 = vld [vmem:[%s277_s19 + $0x10] sm:$0xff]  ;;  %s754_s28 = scalar_lea.hbm %s753_s16, 64  ;;  %p759_p0 = scmp.lt.s32.totalorder %s753_s16, %s982_s7 }
  0x17   : > { %631 = vmatmul.msk.bf16.vlgmr.msra.gmra.mxu0 %vm321_vm0, %v664_v1  ;;  %v667_v4 = vld [vmem:[%s277_s19 + $0x18] sm:$0xff]  ;;  %v671_v37 = vld [vmem:[%s980_s5] sm:$0xff]  ;;  %p755_p11 = scmp.ne.s32.totalorder %s753_s16, %s754_s28  ;;  %s758_s19 = scalar_lea.hbm %s982_s7, 256 }
  0x18   : > { %415 = vmatpush.bf16.msra.mxu1 %v669_v6  ;;  %v720_v39 = vld [vmem:[%s979_s4] ss:$0 sm:$0xff]  ;;  %p760_p1 = scmp.lt.s32.totalorder %s758_s19, %s754_s28 }
  0x19   : > { %675 = vmatpush.bf16.msra.mxu3 %v669_v6  ;;  %677 = vmatpush.bf16.msra.mxu2 %v671_v37  ;;  %p756_p12 = pnand %p755_p11, %p882_p5 }
  0x1a   : > { %p761_p2 = por %p760_p1, %p759_p0 }
  0x1b   : > { %p757_p13 = pneg %p756_p12 }
  0x1c   : > { %487 = vmatpush.bf16.msrb.mxu1 %v672_v36 }
  0x1d   : > { %p762_p3 = pnand %p761_p2, %p757_p13 }
  0x20   : > { %488 = vmatpush.bf16.msrb.mxu1 %v671_v37 }
  0x27   : > { %632 = vmatmul.msk.bf16.gmra.mxu0 %vm321_vm0, %v665_v2 }
  0x37   : > { %633 = vmatmul.msk.bf16.gmra.mxu0 %vm321_vm0, %v666_v3  ;;  %v721_v3 = vld [vmem:[%s981_s6] ss:$0 sm:$0xff] }
  0x47   : > { %634 = vmatmul.msk.bf16.gmra.mxu0 %vm321_vm0, %v667_v4 }
  0x94   : > { %v343_v7 = vpop.f32.mrf.mxu0 }
  0x95   : > { %v344_v9 = vadd.f32 %v719_v8, %v343_v7 }
  0x97   : > { %v363_v12 = vmax.f32 %v344_v9, 0.0 }
  0x9c   : > { %v345_v10 = vpop.f32.mrf.mxu0 }
  0x9d   : > { %v346_v11 = vadd.f32 %v719_v8, %v345_v10 }
  0x9f   : > { %v364_v13 = vmax.f32 %v346_v11, 0.0 }
  0xa1   : > { %v371_v14 = vpack.c.bf16 %v364_v13, %v363_v12 }
  0xa3   : > { %643 = vmatmul.msk.bf16.vlgmr.msra.gmra.mxu1 %vm395_vm1, %v371_v14 }
  0xa4   : > { %v348_v15 = vpop.f32.mrf.mxu0 }
  0xa5   : > { %v349_v16 = vadd.f32 %v719_v8, %v348_v15 }
  0xa7   : > { %v365_v19 = vmax.f32 %v349_v16, 0.0 }
  0xac   : > { %v350_v17 = vpop.f32.mrf.mxu0 }
  0xad   : > { %v351_v18 = vadd.f32 %v719_v8, %v350_v17 }
  0xaf   : > { %v366_v20 = vmax.f32 %v351_v18, 0.0 }
  0xb1   : > { %v372_v21 = vpack.c.bf16 %v366_v20, %v365_v19 }
  0xb3   : > { %644 = vmatmul.msk.bf16.vlgmr.msra.gmra.mxu3 %vm395_vm1, %v372_v21 }
  0xb4   : > { %v353_v22 = vpop.f32.mrf.mxu0 }
  0xb5   : > { %v354_v23 = vadd.f32 %v719_v8, %v353_v22 }
  0xb7   : > { %v367_v26 = vmax.f32 %v354_v23, 0.0 }
  0xbc   : > { %v355_v24 = vpop.f32.mrf.mxu0 }
  0xbd   : > { %v356_v25 = vadd.f32 %v719_v8, %v355_v24 }
  0xbf   : > { %v368_v27 = vmax.f32 %v356_v25, 0.0 }
  0xc1   : > { %v373_v28 = vpack.c.bf16 %v368_v27, %v367_v26 }
  0xc3   : > { %645 = vmatmul.msk.bf16.gmra.mxu3 %vm395_vm1, %v373_v28 }
  0xc4   : > { %v358_v29 = vpop.f32.mrf.mxu0 }
  0xc5   : > { %v359_v30 = vadd.f32 %v719_v8, %v358_v29 }
  0xc7   : > { %v369_v33 = vmax.f32 %v359_v30, 0.0 }
  0xcc   : > { %v360_v31 = vpop.f32.mrf.mxu0 }
  0xcd   : > { %v361_v32 = vadd.f32 %v719_v8, %v360_v31 }
  0xcf   : > { %v370_v34 = vmax.f32 %v361_v32, 0.0 }
  0xd1   : > { %v374_v35 = vpack.c.bf16 %v370_v34, %v369_v33 }
  0xd3   : > { %646 = vmatmul.msk.bf16.gmra.mxu3 %vm395_vm1, %v374_v35 }
 0x120   : > { %v417_v38 = vpop.f32.mrf.mxu1 }
 0x121   : > { %v418_v40 = vadd.f32 %v720_v39, %v417_v38 }
 0x123   : > { %v437_v43 = vmax.f32 %v418_v40, 0.0 }
 0x128   : > { %v419_v41 = vpop.f32.mrf.mxu1 }
 0x129   : > { %v420_v42 = vadd.f32 %v720_v39, %v419_v41 }
 0x12b   : > { %v438_v44 = vmax.f32 %v420_v42, 0.0 }
 0x12d   : > { %v445_v45 = vpack.c.bf16 %v438_v44, %v437_v43 }
 0x12f   : > { %655 = vmatmul.msk.bf16.vlgmr.msrb.gmra.mxu1 %vm395_vm1, %v445_v45 }
 0x136   : > { %v422_v46 = vpop.f32.mrf.mxu3 }
 0x137   : > { %v423_v47 = vadd.f32 %v720_v39, %v422_v46 }
 0x139   : > { %v439_v50 = vmax.f32 %v423_v47, 0.0 }
 0x13e   : > { %v424_v48 = vpop.f32.mrf.mxu3 }
 0x13f   : > { %v425_v49 = vadd.f32 %v720_v39, %v424_v48 }
 0x141   : > { %v440_v51 = vmax.f32 %v425_v49, 0.0 }
 0x143   : > { %v446_v52 = vpack.c.bf16 %v440_v51, %v439_v50 }
 0x145   : > { %656 = vmatmul.msk.bf16.vlgmr.msra.gmra.mxu2 %vm395_vm1, %v446_v52 }
 0x146   : > { %v427_v53 = vpop.f32.mrf.mxu3 }
 0x147   : > { %v428_v54 = vadd.f32 %v720_v39, %v427_v53 }
 0x149   : > { %v441_v57 = vmax.f32 %v428_v54, 0.0 }
 0x14e   : > { %v429_v55 = vpop.f32.mrf.mxu3 }
 0x14f   : > { %v430_v56 = vadd.f32 %v720_v39, %v429_v55 }
 0x151   : > { %v442_v58 = vmax.f32 %v430_v56, 0.0 }
 0x153   : > { %v447_v59 = vpack.c.bf16 %v442_v58, %v441_v57 }
 0x155   : > { %657 = vmatmul.msk.bf16.gmra.mxu2 %vm395_vm1, %v447_v59 }
 0x156   : > { %v432_v60 = vpop.f32.mrf.mxu3 }
 0x157   : > { %v433_v61 = vadd.f32 %v720_v39, %v432_v60 }
 0x159   : > { %v443_v0 = vmax.f32 %v433_v61, 0.0 }
 0x15e   : > { %v434_v62 = vpop.f32.mrf.mxu3 }
 0x15f   : > { %v435_v63 = vadd.f32 %v720_v39, %v434_v62 }
 0x161   : > { %v444_v1 = vmax.f32 %v435_v63, 0.0 }
 0x163   : > { %v448_v2 = vpack.c.bf16 %v444_v1, %v443_v0 }
 0x165   : > { %658 = vmatmul.msk.bf16.gmra.mxu2 %vm395_vm1, %v448_v2 }
 0x1ac   : > { %v490_v4 = vpop.f32.mrf.mxu1 }
 0x1ad   : > { %v491_v5 = vadd.f32 %v721_v3, %v490_v4 }
 0x1af   : > { %722 = vtanh.f32 %v491_v5 }
 0x1b4   : > { %v492_v6 = vpop.f32.mrf.mxu1 }
 0x1b5   : > { %v723_v7 = vpop.eup %722  ;;  %v493_v8 = vadd.f32 %v721_v3, %v492_v6 }
 0x1b6   : > { %518 = vst [vmem:[%s931_s22] sm:$0xff] %v723_v7 }
 0x1b7   : > { %724 = vtanh.f32 %v493_v8 }
 0x1bd   : > { %v725_v9 = vpop.eup %724 }
 0x1be   : > { %519 = vst [vmem:[%s931_s22 + $0x8] sm:$0xff] %v725_v9 }
 0x1c8   : > { %v495_v10 = vpop.f32.mrf.mxu2 }
 0x1c9   : > { %v496_v11 = vadd.f32 %v721_v3, %v495_v10 }
 0x1cb   : > { %726 = vtanh.f32 %v496_v11 }
 0x1d0   : > { %v497_v12 = vpop.f32.mrf.mxu2 }
 0x1d1   : > { %v727_v13 = vpop.eup %726  ;;  %v498_v14 = vadd.f32 %v721_v3, %v497_v12 }
 0x1d2   : > { %520 = vst [vmem:[%s931_s22 + $0x10] sm:$0xff] %v727_v13 }
 0x1d3   : > { %728 = vtanh.f32 %v498_v14 }
 0x1d8   : > { %v500_v15 = vpop.f32.mrf.mxu2 }
 0x1d9   : > { %v729_v16 = vpop.eup %728  ;;  %v501_v17 = vadd.f32 %v721_v3, %v500_v15 }
 0x1da   : > { %521 = vst [vmem:[%s931_s22 + $0x18] sm:$0xff] %v729_v16 }
 0x1db   : > { %730 = vtanh.f32 %v501_v17 }
 0x1e0   : > { %v502_v18 = vpop.f32.mrf.mxu2 }
 0x1e1   : > { %v731_v19 = vpop.eup %730  ;;  %v503_v20 = vadd.f32 %v721_v3, %v502_v18 }
 0x1e2   : > { %522 = vst [vmem:[%s931_s22 + $0x20] sm:$0xff] %v731_v19 }
 0x1e3   : > { %732 = vtanh.f32 %v503_v20 }
 0x1e8   : > { %v505_v21 = vpop.f32.mrf.mxu2 }
 0x1e9   : > { %v733_v22 = vpop.eup %732  ;;  %v506_v23 = vadd.f32 %v721_v3, %v505_v21 }
 0x1ea   : > { %523 = vst [vmem:[%s931_s22 + $0x28] sm:$0xff] %v733_v22 }
 0x1eb   : > { %734 = vtanh.f32 %v506_v23 }
 0x1f0   : > { %v507_v24 = vpop.f32.mrf.mxu2 }
 0x1f1   : > { %v735_v25 = vpop.eup %734  ;;  %v508_v26 = vadd.f32 %v721_v3, %v507_v24 }
 0x1f2   : > { %524 = vst [vmem:[%s931_s22 + $0x30] sm:$0xff] %v735_v25 }
 0x1f3   : > { %736 = vtanh.f32 %v508_v26 }
 0x1f9   : > { %v737_v27 = vpop.eup %736 }
 0x1fa   : > { %525 = vst [vmem:[%s931_s22 + $0x38] sm:$0xff] %v737_v27 }
 0x1fb   : > { %765 = shalt.err (!%p762_p3)
}
 0x1fc   : > { %s802_s20 = smov 128   ;;  %s803_s22 = smov 8  }
 0x1fd   : > { %678 = dma.vmem_to_hbm [thread:$0]  (%p882_p5), %s540_s13, 1024, %s542_s14, %s527_s15, %s802_s20, %s802_s20, %s803_s22  }
 0x1fe PF: > { %p684_p4 = scmp.ge.s32.totalorder %s800_s27, 2  ;;  %s556_s29 = sand.u32 1, %s788_s24  }
 0x1ff   : > { %s557_s8 = scalar_lea.sflag [#allocation3], %s556_s29 }
 0x200   : > { %p681_p7 = pnand %p684_p4, %p886_p6 }
 0x202   : > { %p682_p8 = pneg %p681_p7 }
 0x204   : > { %783 = dma.done.wait (%p682_p8), %s557_s8, 1024  }
 0x205   : > { %785 = vsyncadd (%p682_p8), %s557_s8, 4294966272  ;;  %p17_p9 = scmp.ge.s32.totalorder %s869_s30, 6   ;;  %s985_s24 = smov %s792_s25 }
 0x206   : > { %s986_s25 = smov %s796_s26  ;;  %s987_s26 = smov %s880_s10 }
 0x207   : > { %s988_s27 = smov %s869_s30  ;;  %19 = sbr.rel (!%p17_p9) target bundleno = 3 (0x3), region = 83 }
 0x20c   :  { %563 = vsyncpa [#allocation3], 1 }
 0x20d   :  { %565 = vsyncpa [#allocation3 + $0x1], 1 }

</bundles_post_ra>
